<compile_context>
chip_gen: v6e
topology: v6e:2x2x1
jax: 0.10.0
libtpu: 0.0.40
codegen_flags: <defaults>
</compile_context>

<pallas_src>
import functools

import numpy as np
import jax
import jax.numpy as jnp
from jax import lax
from jax.experimental import pallas as pl
from jax.experimental.pallas import tpu as pltpu


def _csam_kernel(w_ref, b_ref, g_ref, x_ref, lo_ref, hi_ref, out_ref, *, width):
    """One (batch, channel-tile) step of CSAM.

    w_ref  : (27,)      SMEM  flattened 3x3x3 conv weight (kd, kh, kw order)
    b_ref  : (1,)       SMEM  conv bias
    g_ref  : (1,)       SMEM  gamma
    x_ref  : (tc, HW)   VMEM  channel tile, spatial dims flattened (lane-dense)
    lo_ref : (1, HW)    VMEM  channel plane just below the tile (ignored at ci==0)
    hi_ref : (1, HW)    VMEM  channel plane just above the tile (ignored at last ci)
    out_ref: (tc, HW)   VMEM
    """
    tc, HW = x_ref.shape
    W = width
    ci = pl.program_id(1)
    nc = pl.num_programs(1)

    x = x_ref[...].astype(jnp.float32)
    # Zero the channel halo planes at the C boundaries (clamped DMA brought in a
    # valid-but-unwanted plane there); scalar gate * plane is branch-free.
    lo = lo_ref[...].astype(jnp.float32) * (ci > 0).astype(jnp.float32)
    hi = hi_ref[...].astype(jnp.float32) * (ci < nc - 1).astype(jnp.float32)
    xc = jnp.concatenate([lo, x, hi], axis=0)            # (tc + 2, HW), C-haloed

    # Column masks on the flattened spatial axis: a dx=-1 tap is invalid at w==0,
    # a dx=+1 tap is invalid at w==W-1.
    col = lax.broadcasted_iota(jnp.int32, (1, HW), 1) % W
    not_first = (col != 0).astype(jnp.float32)
    not_last = (col != (W - 1)).astype(jnp.float32)

    acc = jnp.full((tc, HW), b_ref[0], dtype=jnp.float32)
    # Hoist the 9 spatial shifts (shared across the 3 channel taps each).
    for kh in range(3):
        for kw in range(3):
            s = (kh - 1) * W + (kw - 1)                   # flat-spatial shift
            if s == 0:
                sh = xc
            elif s > 0:
                pad = jnp.zeros((tc + 2, s), jnp.float32)
                sh = jnp.concatenate([xc[:, s:], pad], axis=1)
            else:
                pad = jnp.zeros((tc + 2, -s), jnp.float32)
                sh = jnp.concatenate([pad, xc[:, :s]], axis=1)
            if kw == 0:
                sh = sh * not_first
            elif kw == 2:
                sh = sh * not_last
            for kd in range(3):
                wgt = w_ref[kd * 9 + kh * 3 + kw]
                acc = acc + wgt * sh[kd:kd + tc, :]

    att = jax.nn.sigmoid(acc) * g_ref[0]
    out_ref[...] = (x * att + x).astype(out_ref.dtype)


@functools.partial(jax.jit, static_argnames=("c_tile",))
def csam_forward(x, conv_w, conv_b, gamma, *, c_tile=None):
    """Pallas implementation of CSAM_Module.forward.  x: (B, C, H, W)."""
    B, C, H, W = x.shape
    HW = H * W
    x = x.astype(jnp.float32)
    tc = C if c_tile is None else min(int(c_tile), C)
    assert C % tc == 0, "channel tile must divide C"
    nc = C // tc

    # Two metadata-only views of the same x buffer (no HBM duplication).
    x_tiles = x.reshape(B, nc, tc, HW)      # main channel-tile view (lane-dense)
    x_planes = x.reshape(B, C, 1, HW)       # per-channel-plane view for the halos

    w_flat = conv_w.reshape(27).astype(jnp.float32)
    b = conv_b.reshape(1).astype(jnp.float32)
    g = jnp.reshape(gamma, (1,)).astype(jnp.float32)

    kernel = functools.partial(_csam_kernel, width=W)

    out = pl.pallas_call(
        kernel,
        out_shape=jax.ShapeDtypeStruct((B, nc, tc, HW), jnp.float32),
        grid=(B, nc),
        in_specs=[
            pl.BlockSpec(memory_space=pltpu.MemorySpace.SMEM),   # conv weight
            pl.BlockSpec(memory_space=pltpu.MemorySpace.SMEM),   # conv bias
            pl.BlockSpec(memory_space=pltpu.MemorySpace.SMEM),   # gamma
            # main channel tile of this batch element
            pl.BlockSpec((None, None, tc, HW), lambda bi, ci: (bi, ci, 0, 0)),
            # 1-plane channel halos; index clamped, kernel zeroes them at the
            # C boundary instead of reading out of range.
            pl.BlockSpec((None, None, 1, HW),
                         lambda bi, ci: (bi, jnp.maximum(ci * tc - 1, 0), 0, 0)),
            pl.BlockSpec((None, None, 1, HW),
                         lambda bi, ci: (bi, jnp.minimum(ci * tc + tc, C - 1), 0, 0)),
        ],
        out_specs=pl.BlockSpec((None, None, tc, HW), lambda bi, ci: (bi, ci, 0, 0)),
        compiler_params=pltpu.CompilerParams(
            dimension_semantics=("parallel", "parallel")),
    )(w_flat, b, g, x_tiles, x_planes, x_planes)
    return out.reshape(B, C, H, W)
    # TODO(synk): for very large C*H*W a second (spatial) tiling level with a
    # row halo would bound per-step VMEM further; unnecessary at these sizes.


def csam_reference(x, conv_w, conv_b, gamma):
    """Pure-JAX reference mirroring the PyTorch forward exactly."""
    B, C, H, W = x.shape
    out = x[:, None]                                    # (B, 1, C, H, W)
    out = lax.conv_general_dilated(
        out, conv_w,
        window_strides=(1, 1, 1),
        padding=((1, 1), (1, 1), (1, 1)),
        dimension_numbers=("NCDHW", "OIDHW", "NCDHW"),
        precision=lax.Precision.HIGHEST)
    out = out + conv_b.reshape(1, 1, 1, 1, 1)
    out = jax.nn.sigmoid(out)
    out = gamma * out
    out = out.reshape(B, C, H, W)
    return x * out + x


if __name__ == "__main__":
    key = jax.random.PRNGKey(0)
    kx, kw, kb, kx2 = jax.random.split(key, 4)

    B, C, H, W = 2, 4, 16, 16
    x = jax.random.normal(kx, (B, C, H, W), dtype=jnp.float32)

    # nn.Conv3d(1, 1, 3): weight (1,1,3,3,3), bias (1,)  (kaiming-uniform-like bound)
    bound = 1.0 / np.sqrt(27.0)
    conv_w = jax.random.uniform(kw, (1, 1, 3, 3, 3), jnp.float32, -bound, bound)
    conv_b = jax.random.uniform(kb, (1,), jnp.float32, -bound, bound)

    # gamma = 0 (faithful to __init__): output must equal input.
    gamma0 = jnp.zeros((1,), jnp.float32)
    out0 = jax.block_until_ready(csam_forward(x, conv_w, conv_b, gamma0))
    ref0 = csam_reference(x, conv_w, conv_b, gamma0)
    assert jnp.allclose(out0, ref0, atol=1e-4, rtol=1e-4)
    assert jnp.allclose(out0, x, atol=1e-4, rtol=1e-4)

    # Nonzero gamma exercises the conv / sigmoid / residual path.
    gamma1 = jnp.array([0.5], jnp.float32)
    out1 = jax.block_until_ready(csam_forward(x, conv_w, conv_b, gamma1))
    ref1 = csam_reference(x, conv_w, conv_b, gamma1)
    assert jnp.allclose(out1, ref1, atol=1e-4, rtol=1e-4)

    # Channel-tiled variant (C = 16, tc = 8): exercises the channel-halo path.
    x2 = jax.random.normal(kx2, (B, 16, H, W), dtype=jnp.float32)
    out2 = jax.block_until_ready(csam_forward(x2, conv_w, conv_b, gamma1, c_tile=8))
    ref2 = csam_reference(x2, conv_w, conv_b, gamma1)
    assert jnp.allclose(out2, ref2, atol=1e-4, rtol=1e-4)

    print("KERNEL_OK")
</pallas_src>

<mosaic_0001>
module attributes {stable_mosaic.version = 11 : i64} {
  func.func @_csam_kernel(%arg0: i32, %arg1: i32, %arg2: memref<27xf32, #tpu.memory_space<smem>>, %arg3: memref<1xf32, #tpu.memory_space<smem>>, %arg4: memref<1xf32, #tpu.memory_space<smem>>, %arg5: memref<1x1x4x256xf32, #tpu.memory_space<vmem>>, %arg6: memref<1x1x1x256xf32, #tpu.memory_space<vmem>>, %arg7: memref<1x1x1x256xf32, #tpu.memory_space<vmem>>, %arg8: memref<1x1x4x256xf32, #tpu.memory_space<vmem>>) attributes {dimension_semantics = [#tpu.dimension_semantics<parallel>, #tpu.dimension_semantics<parallel>], iteration_bounds = array<i64: 2, 1>, scalar_prefetch = 0 : i64, scratch_operands = 0 : i64, tpu.core_type = #tpu.core_type<tc>, window_params = [{transform_indices = @transform_0, window_bounds = array<i64: 27>}, {transform_indices = @transform_1, window_bounds = array<i64: 1>}, {transform_indices = @transform_2, window_bounds = array<i64: 1>}, {transform_indices = @transform_3, window_bounds = array<i64: 1, 1, 4, 256>}, {transform_indices = @transform_4, window_bounds = array<i64: 1, 1, 1, 256>}, {transform_indices = @transform_5, window_bounds = array<i64: 1, 1, 1, 256>}, {transform_indices = @transform_6, window_bounds = array<i64: 1, 1, 4, 256>}]} {
    %c0 = arith.constant 0 : index
    %c0_0 = arith.constant 0 : index
    %c0_1 = arith.constant 0 : index
    %c0_2 = arith.constant 0 : index
    %0 = vector.load %arg5[%c0, %c0_0, %c0_1, %c0_2] : memref<1x1x4x256xf32, #tpu.memory_space<vmem>>, vector<1x1x4x256xf32>
    %1 = vector.shape_cast %0 : vector<1x1x4x256xf32> to vector<4x256xf32>
    %c0_3 = arith.constant 0 : index
    %c0_4 = arith.constant 0 : index
    %c0_5 = arith.constant 0 : index
    %c0_6 = arith.constant 0 : index
    %2 = vector.load %arg6[%c0_3, %c0_4, %c0_5, %c0_6] : memref<1x1x1x256xf32, #tpu.memory_space<vmem>>, vector<1x1x1x256xf32>
    %3 = vector.shape_cast %2 : vector<1x1x1x256xf32> to vector<1x256xf32>
    %c0_i32 = arith.constant 0 : i32
    %4 = arith.cmpi sgt, %arg1, %c0_i32 : i32
    %5 = arith.extui %4 : i1 to i32
    %6 = arith.sitofp %5 : i32 to f32
    %7 = vector.broadcast %6 : f32 to vector<1x256xf32>
    %8 = arith.mulf %3, %7 : vector<1x256xf32>
    %c0_7 = arith.constant 0 : index
    %c0_8 = arith.constant 0 : index
    %c0_9 = arith.constant 0 : index
    %c0_10 = arith.constant 0 : index
    %9 = vector.load %arg7[%c0_7, %c0_8, %c0_9, %c0_10] : memref<1x1x1x256xf32, #tpu.memory_space<vmem>>, vector<1x1x1x256xf32>
    %10 = vector.shape_cast %9 : vector<1x1x1x256xf32> to vector<1x256xf32>
    %c0_i32_11 = arith.constant 0 : i32
    %11 = arith.cmpi slt, %arg1, %c0_i32_11 : i32
    %12 = arith.extui %11 : i1 to i32
    %13 = arith.sitofp %12 : i32 to f32
    %14 = vector.broadcast %13 : f32 to vector<1x256xf32>
    %15 = arith.mulf %10, %14 : vector<1x256xf32>
    %16 = tpu.concatenate %8, %1, %15 in 0 : vector<1x256xf32>, vector<4x256xf32>, vector<1x256xf32> -> vector<6x256xf32>
    %17 = tpu.iota {dimensions = array<i32: 1>} : vector<1x256xi32>
    %c16_i32 = arith.constant 16 : i32
    %c0_i32_12 = arith.constant 0 : i32
    %18 = arith.cmpi eq, %c16_i32, %c0_i32_12 : i32
    %c1_i32 = arith.constant 1 : i32
    %19 = arith.select %18, %c1_i32, %c16_i32 : i32
    %20 = vector.broadcast %19 : i32 to vector<1x256xi32>
    %21 = arith.remsi %17, %20 : vector<1x256xi32>
    %c0_i32_13 = arith.constant 0 : i32
    %22 = vector.broadcast %c0_i32_13 : i32 to vector<1x256xi32>
    %23 = arith.cmpi ne, %21, %22 : vector<1x256xi32>
    %c0_i32_14 = arith.constant 0 : i32
    %24 = vector.broadcast %c0_i32_14 : i32 to vector<1x256xi32>
    %25 = arith.cmpi slt, %21, %24 : vector<1x256xi32>
    %c0_i32_15 = arith.constant 0 : i32
    %26 = arith.cmpi slt, %19, %c0_i32_15 : i32
    %27 = vector.broadcast %26 : i1 to vector<1x256xi1>
    %28 = vector.broadcast %27 : vector<1x256xi1> to vector<1x256xi1>
    %29 = arith.xori %25, %28 : vector<1x256xi1>
    %30 = arith.andi %29, %23 : vector<1x256xi1>
    %31 = vector.broadcast %19 : i32 to vector<1x256xi32>
    %32 = arith.addi %21, %31 : vector<1x256xi32>
    %33 = arith.select %30, %32, %21 : vector<1x256xi1>, vector<1x256xi32>
    %c0_i32_16 = arith.constant 0 : i32
    %34 = vector.broadcast %c0_i32_16 : i32 to vector<1x256xi32>
    %35 = arith.cmpi ne, %33, %34 : vector<1x256xi32>
    %36 = arith.extui %35 : vector<1x256xi1> to vector<1x256xi32>
    %37 = arith.sitofp %36 : vector<1x256xi32> to vector<1x256xf32>
    %c15_i32 = arith.constant 15 : i32
    %38 = vector.broadcast %c15_i32 : i32 to vector<1x256xi32>
    %39 = arith.cmpi ne, %33, %38 : vector<1x256xi32>
    %40 = arith.extui %39 : vector<1x256xi1> to vector<1x256xi32>
    %41 = arith.sitofp %40 : vector<1x256xi32> to vector<1x256xf32>
    %c0_17 = arith.constant 0 : index
    %42 = memref.load %arg3[%c0_17] : memref<1xf32, #tpu.memory_space<smem>>
    %43 = vector.broadcast %42 : f32 to vector<4x256xf32>
    %cst = arith.constant 0.000000e+00 : f32
    %44 = vector.broadcast %cst : f32 to vector<6x17xf32>
    %45 = vector.extract_strided_slice %16 {offsets = [0, 0], sizes = [6, 239], strides = [1, 1]} : vector<6x256xf32> to vector<6x239xf32>
    %46 = tpu.concatenate %44, %45 in 1 : vector<6x17xf32>, vector<6x239xf32> -> vector<6x256xf32>
    %47 = vector.broadcast %37 : vector<1x256xf32> to vector<6x256xf32>
    %48 = arith.mulf %46, %47 : vector<6x256xf32>
    %c0_18 = arith.constant 0 : index
    %49 = memref.load %arg2[%c0_18] : memref<27xf32, #tpu.memory_space<smem>>
    %50 = vector.extract_strided_slice %48 {offsets = [0, 0], sizes = [4, 256], strides = [1, 1]} : vector<6x256xf32> to vector<4x256xf32>
    %51 = vector.broadcast %49 : f32 to vector<4x256xf32>
    %52 = arith.mulf %51, %50 : vector<4x256xf32>
    %53 = arith.addf %43, %52 : vector<4x256xf32>
    %c9 = arith.constant 9 : index
    %54 = memref.load %arg2[%c9] : memref<27xf32, #tpu.memory_space<smem>>
    %55 = vector.extract_strided_slice %48 {offsets = [1, 0], sizes = [4, 256], strides = [1, 1]} : vector<6x256xf32> to vector<4x256xf32>
    %56 = vector.broadcast %54 : f32 to vector<4x256xf32>
    %57 = arith.mulf %56, %55 : vector<4x256xf32>
    %58 = arith.addf %53, %57 : vector<4x256xf32>
    %c18 = arith.constant 18 : index
    %59 = memref.load %arg2[%c18] : memref<27xf32, #tpu.memory_space<smem>>
    %60 = vector.extract_strided_slice %48 {offsets = [2, 0], sizes = [4, 256], strides = [1, 1]} : vector<6x256xf32> to vector<4x256xf32>
    %61 = vector.broadcast %59 : f32 to vector<4x256xf32>
    %62 = arith.mulf %61, %60 : vector<4x256xf32>
    %63 = arith.addf %58, %62 : vector<4x256xf32>
    %cst_19 = arith.constant 0.000000e+00 : f32
    %64 = vector.broadcast %cst_19 : f32 to vector<6x16xf32>
    %65 = vector.extract_strided_slice %16 {offsets = [0, 0], sizes = [6, 240], strides = [1, 1]} : vector<6x256xf32> to vector<6x240xf32>
    %66 = tpu.concatenate %64, %65 in 1 : vector<6x16xf32>, vector<6x240xf32> -> vector<6x256xf32>
    %c1 = arith.constant 1 : index
    %67 = memref.load %arg2[%c1] : memref<27xf32, #tpu.memory_space<smem>>
    %68 = vector.extract_strided_slice %66 {offsets = [0, 0], sizes = [4, 256], strides = [1, 1]} : vector<6x256xf32> to vector<4x256xf32>
    %69 = vector.broadcast %67 : f32 to vector<4x256xf32>
    %70 = arith.mulf %69, %68 : vector<4x256xf32>
    %71 = arith.addf %63, %70 : vector<4x256xf32>
    %c10 = arith.constant 10 : index
    %72 = memref.load %arg2[%c10] : memref<27xf32, #tpu.memory_space<smem>>
    %73 = vector.extract_strided_slice %66 {offsets = [1, 0], sizes = [4, 256], strides = [1, 1]} : vector<6x256xf32> to vector<4x256xf32>
    %74 = vector.broadcast %72 : f32 to vector<4x256xf32>
    %75 = arith.mulf %74, %73 : vector<4x256xf32>
    %76 = arith.addf %71, %75 : vector<4x256xf32>
    %c19 = arith.constant 19 : index
    %77 = memref.load %arg2[%c19] : memref<27xf32, #tpu.memory_space<smem>>
    %78 = vector.extract_strided_slice %66 {offsets = [2, 0], sizes = [4, 256], strides = [1, 1]} : vector<6x256xf32> to vector<4x256xf32>
    %79 = vector.broadcast %77 : f32 to vector<4x256xf32>
    %80 = arith.mulf %79, %78 : vector<4x256xf32>
    %81 = arith.addf %76, %80 : vector<4x256xf32>
    %cst_20 = arith.constant 0.000000e+00 : f32
    %82 = vector.broadcast %cst_20 : f32 to vector<6x15xf32>
    %83 = vector.extract_strided_slice %16 {offsets = [0, 0], sizes = [6, 241], strides = [1, 1]} : vector<6x256xf32> to vector<6x241xf32>
    %84 = tpu.concatenate %82, %83 in 1 : vector<6x15xf32>, vector<6x241xf32> -> vector<6x256xf32>
    %85 = vector.broadcast %41 : vector<1x256xf32> to vector<6x256xf32>
    %86 = arith.mulf %84, %85 : vector<6x256xf32>
    %c2 = arith.constant 2 : index
    %87 = memref.load %arg2[%c2] : memref<27xf32, #tpu.memory_space<smem>>
    %88 = vector.extract_strided_slice %86 {offsets = [0, 0], sizes = [4, 256], strides = [1, 1]} : vector<6x256xf32> to vector<4x256xf32>
    %89 = vector.broadcast %87 : f32 to vector<4x256xf32>
    %90 = arith.mulf %89, %88 : vector<4x256xf32>
    %91 = arith.addf %81, %90 : vector<4x256xf32>
    %c11 = arith.constant 11 : index
    %92 = memref.load %arg2[%c11] : memref<27xf32, #tpu.memory_space<smem>>
    %93 = vector.extract_strided_slice %86 {offsets = [1, 0], sizes = [4, 256], strides = [1, 1]} : vector<6x256xf32> to vector<4x256xf32>
    %94 = vector.broadcast %92 : f32 to vector<4x256xf32>
    %95 = arith.mulf %94, %93 : vector<4x256xf32>
    %96 = arith.addf %91, %95 : vector<4x256xf32>
    %c20 = arith.constant 20 : index
    %97 = memref.load %arg2[%c20] : memref<27xf32, #tpu.memory_space<smem>>
    %98 = vector.extract_strided_slice %86 {offsets = [2, 0], sizes = [4, 256], strides = [1, 1]} : vector<6x256xf32> to vector<4x256xf32>
    %99 = vector.broadcast %97 : f32 to vector<4x256xf32>
    %100 = arith.mulf %99, %98 : vector<4x256xf32>
    %101 = arith.addf %96, %100 : vector<4x256xf32>
    %cst_21 = arith.constant 0.000000e+00 : f32
    %102 = vector.broadcast %cst_21 : f32 to vector<6x1xf32>
    %103 = vector.extract_strided_slice %16 {offsets = [0, 0], sizes = [6, 255], strides = [1, 1]} : vector<6x256xf32> to vector<6x255xf32>
    %104 = tpu.concatenate %102, %103 in 1 : vector<6x1xf32>, vector<6x255xf32> -> vector<6x256xf32>
    %105 = vector.broadcast %37 : vector<1x256xf32> to vector<6x256xf32>
    %106 = arith.mulf %104, %105 : vector<6x256xf32>
    %c3 = arith.constant 3 : index
    %107 = memref.load %arg2[%c3] : memref<27xf32, #tpu.memory_space<smem>>
    %108 = vector.extract_strided_slice %106 {offsets = [0, 0], sizes = [4, 256], strides = [1, 1]} : vector<6x256xf32> to vector<4x256xf32>
    %109 = vector.broadcast %107 : f32 to vector<4x256xf32>
    %110 = arith.mulf %109, %108 : vector<4x256xf32>
    %111 = arith.addf %101, %110 : vector<4x256xf32>
    %c12 = arith.constant 12 : index
    %112 = memref.load %arg2[%c12] : memref<27xf32, #tpu.memory_space<smem>>
    %113 = vector.extract_strided_slice %106 {offsets = [1, 0], sizes = [4, 256], strides = [1, 1]} : vector<6x256xf32> to vector<4x256xf32>
    %114 = vector.broadcast %112 : f32 to vector<4x256xf32>
    %115 = arith.mulf %114, %113 : vector<4x256xf32>
    %116 = arith.addf %111, %115 : vector<4x256xf32>
    %c21 = arith.constant 21 : index
    %117 = memref.load %arg2[%c21] : memref<27xf32, #tpu.memory_space<smem>>
    %118 = vector.extract_strided_slice %106 {offsets = [2, 0], sizes = [4, 256], strides = [1, 1]} : vector<6x256xf32> to vector<4x256xf32>
    %119 = vector.broadcast %117 : f32 to vector<4x256xf32>
    %120 = arith.mulf %119, %118 : vector<4x256xf32>
    %121 = arith.addf %116, %120 : vector<4x256xf32>
    %c4 = arith.constant 4 : index
    %122 = memref.load %arg2[%c4] : memref<27xf32, #tpu.memory_space<smem>>
    %123 = vector.extract_strided_slice %16 {offsets = [0, 0], sizes = [4, 256], strides = [1, 1]} : vector<6x256xf32> to vector<4x256xf32>
    %124 = vector.broadcast %122 : f32 to vector<4x256xf32>
    %125 = arith.mulf %124, %123 : vector<4x256xf32>
    %126 = arith.addf %121, %125 : vector<4x256xf32>
    %c13 = arith.constant 13 : index
    %127 = memref.load %arg2[%c13] : memref<27xf32, #tpu.memory_space<smem>>
    %128 = vector.extract_strided_slice %16 {offsets = [1, 0], sizes = [4, 256], strides = [1, 1]} : vector<6x256xf32> to vector<4x256xf32>
    %129 = vector.broadcast %127 : f32 to vector<4x256xf32>
    %130 = arith.mulf %129, %128 : vector<4x256xf32>
    %131 = arith.addf %126, %130 : vector<4x256xf32>
    %c22 = arith.constant 22 : index
    %132 = memref.load %arg2[%c22] : memref<27xf32, #tpu.memory_space<smem>>
    %133 = vector.extract_strided_slice %16 {offsets = [2, 0], sizes = [4, 256], strides = [1, 1]} : vector<6x256xf32> to vector<4x256xf32>
    %134 = vector.broadcast %132 : f32 to vector<4x256xf32>
    %135 = arith.mulf %134, %133 : vector<4x256xf32>
    %136 = arith.addf %131, %135 : vector<4x256xf32>
    %cst_22 = arith.constant 0.000000e+00 : f32
    %137 = vector.broadcast %cst_22 : f32 to vector<6x1xf32>
    %138 = vector.extract_strided_slice %16 {offsets = [0, 1], sizes = [6, 255], strides = [1, 1]} : vector<6x256xf32> to vector<6x255xf32>
    %139 = tpu.concatenate %138, %137 in 1 : vector<6x255xf32>, vector<6x1xf32> -> vector<6x256xf32>
    %140 = vector.broadcast %41 : vector<1x256xf32> to vector<6x256xf32>
    %141 = arith.mulf %139, %140 : vector<6x256xf32>
    %c5 = arith.constant 5 : index
    %142 = memref.load %arg2[%c5] : memref<27xf32, #tpu.memory_space<smem>>
    %143 = vector.extract_strided_slice %141 {offsets = [0, 0], sizes = [4, 256], strides = [1, 1]} : vector<6x256xf32> to vector<4x256xf32>
    %144 = vector.broadcast %142 : f32 to vector<4x256xf32>
    %145 = arith.mulf %144, %143 : vector<4x256xf32>
    %146 = arith.addf %136, %145 : vector<4x256xf32>
    %c14 = arith.constant 14 : index
    %147 = memref.load %arg2[%c14] : memref<27xf32, #tpu.memory_space<smem>>
    %148 = vector.extract_strided_slice %141 {offsets = [1, 0], sizes = [4, 256], strides = [1, 1]} : vector<6x256xf32> to vector<4x256xf32>
    %149 = vector.broadcast %147 : f32 to vector<4x256xf32>
    %150 = arith.mulf %149, %148 : vector<4x256xf32>
    %151 = arith.addf %146, %150 : vector<4x256xf32>
    %c23 = arith.constant 23 : index
    %152 = memref.load %arg2[%c23] : memref<27xf32, #tpu.memory_space<smem>>
    %153 = vector.extract_strided_slice %141 {offsets = [2, 0], sizes = [4, 256], strides = [1, 1]} : vector<6x256xf32> to vector<4x256xf32>
    %154 = vector.broadcast %152 : f32 to vector<4x256xf32>
    %155 = arith.mulf %154, %153 : vector<4x256xf32>
    %156 = arith.addf %151, %155 : vector<4x256xf32>
    %cst_23 = arith.constant 0.000000e+00 : f32
    %157 = vector.broadcast %cst_23 : f32 to vector<6x15xf32>
    %158 = vector.extract_strided_slice %16 {offsets = [0, 15], sizes = [6, 241], strides = [1, 1]} : vector<6x256xf32> to vector<6x241xf32>
    %159 = tpu.concatenate %158, %157 in 1 : vector<6x241xf32>, vector<6x15xf32> -> vector<6x256xf32>
    %160 = vector.broadcast %37 : vector<1x256xf32> to vector<6x256xf32>
    %161 = arith.mulf %159, %160 : vector<6x256xf32>
    %c6 = arith.constant 6 : index
    %162 = memref.load %arg2[%c6] : memref<27xf32, #tpu.memory_space<smem>>
    %163 = vector.extract_strided_slice %161 {offsets = [0, 0], sizes = [4, 256], strides = [1, 1]} : vector<6x256xf32> to vector<4x256xf32>
    %164 = vector.broadcast %162 : f32 to vector<4x256xf32>
    %165 = arith.mulf %164, %163 : vector<4x256xf32>
    %166 = arith.addf %156, %165 : vector<4x256xf32>
    %c15 = arith.constant 15 : index
    %167 = memref.load %arg2[%c15] : memref<27xf32, #tpu.memory_space<smem>>
    %168 = vector.extract_strided_slice %161 {offsets = [1, 0], sizes = [4, 256], strides = [1, 1]} : vector<6x256xf32> to vector<4x256xf32>
    %169 = vector.broadcast %167 : f32 to vector<4x256xf32>
    %170 = arith.mulf %169, %168 : vector<4x256xf32>
    %171 = arith.addf %166, %170 : vector<4x256xf32>
    %c24 = arith.constant 24 : index
    %172 = memref.load %arg2[%c24] : memref<27xf32, #tpu.memory_space<smem>>
    %173 = vector.extract_strided_slice %161 {offsets = [2, 0], sizes = [4, 256], strides = [1, 1]} : vector<6x256xf32> to vector<4x256xf32>
    %174 = vector.broadcast %172 : f32 to vector<4x256xf32>
    %175 = arith.mulf %174, %173 : vector<4x256xf32>
    %176 = arith.addf %171, %175 : vector<4x256xf32>
    %cst_24 = arith.constant 0.000000e+00 : f32
    %177 = vector.broadcast %cst_24 : f32 to vector<6x16xf32>
    %178 = vector.extract_strided_slice %16 {offsets = [0, 16], sizes = [6, 240], strides = [1, 1]} : vector<6x256xf32> to vector<6x240xf32>
    %179 = tpu.concatenate %178, %177 in 1 : vector<6x240xf32>, vector<6x16xf32> -> vector<6x256xf32>
    %c7 = arith.constant 7 : index
    %180 = memref.load %arg2[%c7] : memref<27xf32, #tpu.memory_space<smem>>
    %181 = vector.extract_strided_slice %179 {offsets = [0, 0], sizes = [4, 256], strides = [1, 1]} : vector<6x256xf32> to vector<4x256xf32>
    %182 = vector.broadcast %180 : f32 to vector<4x256xf32>
    %183 = arith.mulf %182, %181 : vector<4x256xf32>
    %184 = arith.addf %176, %183 : vector<4x256xf32>
    %c16 = arith.constant 16 : index
    %185 = memref.load %arg2[%c16] : memref<27xf32, #tpu.memory_space<smem>>
    %186 = vector.extract_strided_slice %179 {offsets = [1, 0], sizes = [4, 256], strides = [1, 1]} : vector<6x256xf32> to vector<4x256xf32>
    %187 = vector.broadcast %185 : f32 to vector<4x256xf32>
    %188 = arith.mulf %187, %186 : vector<4x256xf32>
    %189 = arith.addf %184, %188 : vector<4x256xf32>
    %c25 = arith.constant 25 : index
    %190 = memref.load %arg2[%c25] : memref<27xf32, #tpu.memory_space<smem>>
    %191 = vector.extract_strided_slice %179 {offsets = [2, 0], sizes = [4, 256], strides = [1, 1]} : vector<6x256xf32> to vector<4x256xf32>
    %192 = vector.broadcast %190 : f32 to vector<4x256xf32>
    %193 = arith.mulf %192, %191 : vector<4x256xf32>
    %194 = arith.addf %189, %193 : vector<4x256xf32>
    %cst_25 = arith.constant 0.000000e+00 : f32
    %195 = vector.broadcast %cst_25 : f32 to vector<6x17xf32>
    %196 = vector.extract_strided_slice %16 {offsets = [0, 17], sizes = [6, 239], strides = [1, 1]} : vector<6x256xf32> to vector<6x239xf32>
    %197 = tpu.concatenate %196, %195 in 1 : vector<6x239xf32>, vector<6x17xf32> -> vector<6x256xf32>
    %198 = vector.broadcast %41 : vector<1x256xf32> to vector<6x256xf32>
    %199 = arith.mulf %197, %198 : vector<6x256xf32>
    %c8 = arith.constant 8 : index
    %200 = memref.load %arg2[%c8] : memref<27xf32, #tpu.memory_space<smem>>
    %201 = vector.extract_strided_slice %199 {offsets = [0, 0], sizes = [4, 256], strides = [1, 1]} : vector<6x256xf32> to vector<4x256xf32>
    %202 = vector.broadcast %200 : f32 to vector<4x256xf32>
    %203 = arith.mulf %202, %201 : vector<4x256xf32>
    %204 = arith.addf %194, %203 : vector<4x256xf32>
    %c17 = arith.constant 17 : index
    %205 = memref.load %arg2[%c17] : memref<27xf32, #tpu.memory_space<smem>>
    %206 = vector.extract_strided_slice %199 {offsets = [1, 0], sizes = [4, 256], strides = [1, 1]} : vector<6x256xf32> to vector<4x256xf32>
    %207 = vector.broadcast %205 : f32 to vector<4x256xf32>
    %208 = arith.mulf %207, %206 : vector<4x256xf32>
    %209 = arith.addf %204, %208 : vector<4x256xf32>
    %c26 = arith.constant 26 : index
    %210 = memref.load %arg2[%c26] : memref<27xf32, #tpu.memory_space<smem>>
    %211 = vector.extract_strided_slice %199 {offsets = [2, 0], sizes = [4, 256], strides = [1, 1]} : vector<6x256xf32> to vector<4x256xf32>
    %212 = vector.broadcast %210 : f32 to vector<4x256xf32>
    %213 = arith.mulf %212, %211 : vector<4x256xf32>
    %214 = arith.addf %209, %213 : vector<4x256xf32>
    %215 = arith.negf %214 : vector<4x256xf32>
    %216 = math.exp %215 : vector<4x256xf32>
    %cst_26 = arith.constant 1.000000e+00 : f32
    %217 = vector.broadcast %cst_26 : f32 to vector<4x256xf32>
    %218 = arith.addf %217, %216 : vector<4x256xf32>
    %219 = arith.divf %217, %218 : vector<4x256xf32>
    %c0_27 = arith.constant 0 : index
    %220 = memref.load %arg4[%c0_27] : memref<1xf32, #tpu.memory_space<smem>>
    %221 = vector.broadcast %220 : f32 to vector<4x256xf32>
    %222 = arith.mulf %219, %221 : vector<4x256xf32>
    %223 = arith.mulf %1, %222 : vector<4x256xf32>
    %224 = arith.addf %223, %1 : vector<4x256xf32>
    %c0_28 = arith.constant 0 : index
    %c0_29 = arith.constant 0 : index
    %c0_30 = arith.constant 0 : index
    %c0_31 = arith.constant 0 : index
    %225 = vector.load %arg8[%c0_28, %c0_29, %c0_30, %c0_31] : memref<1x1x4x256xf32, #tpu.memory_space<vmem>>, vector<1x1x4x256xf32>
    %226 = vector.shape_cast %225 : vector<1x1x4x256xf32> to vector<4x256xf32>
    %227 = vector.shape_cast %224 : vector<4x256xf32> to vector<1x1x4x256xf32>
    tpu.vector_store %arg8[%c0_28, %c0_29, %c0_30, %c0_31], %227 {strides = array<i32>} : memref<1x1x4x256xf32, #tpu.memory_space<vmem>>, vector<1x1x4x256xf32>,
    return
  }
  func.func @transform_0(%arg0: i32, %arg1: i32) -> i32 {
    %c0_i32 = arith.constant 0 : i32
    %c0_i32_0 = arith.constant 0 : i32
    return %c0_i32 : i32
  }
  func.func @transform_1(%arg0: i32, %arg1: i32) -> i32 {
    %c0_i32 = arith.constant 0 : i32
    %c0_i32_0 = arith.constant 0 : i32
    return %c0_i32 : i32
  }
  func.func @transform_2(%arg0: i32, %arg1: i32) -> i32 {
    %c0_i32 = arith.constant 0 : i32
    %c0_i32_0 = arith.constant 0 : i32
    return %c0_i32 : i32
  }
  func.func @transform_3(%arg0: i32, %arg1: i32) -> (i32, i32, i32, i32) {
    %c0_i32 = arith.constant 0 : i32
    %c0_i32_0 = arith.constant 0 : i32
    %c0_i32_1 = arith.constant 0 : i32
    return %arg0, %arg1, %c0_i32, %c0_i32_0 : i32, i32, i32, i32
  }
  func.func @transform_4(%arg0: i32, %arg1: i32) -> (i32, i32, i32, i32) {
    %c4_i32 = arith.constant 4 : i32
    %0 = arith.muli %arg1, %c4_i32 : i32
    %c1_i32 = arith.constant 1 : i32
    %1 = arith.subi %0, %c1_i32 : i32
    %c0_i32 = arith.constant 0 : i32
    %2 = arith.maxsi %1, %c0_i32 : i32
    %c0_i32_0 = arith.constant 0 : i32
    %c0_i32_1 = arith.constant 0 : i32
    %c0_i32_2 = arith.constant 0 : i32
    return %arg0, %2, %c0_i32_0, %c0_i32_1 : i32, i32, i32, i32
  }
  func.func @transform_5(%arg0: i32, %arg1: i32) -> (i32, i32, i32, i32) {
    %c4_i32 = arith.constant 4 : i32
    %0 = arith.muli %arg1, %c4_i32 : i32
    %c4_i32_0 = arith.constant 4 : i32
    %1 = arith.addi %0, %c4_i32_0 : i32
    %c3_i32 = arith.constant 3 : i32
    %2 = arith.minsi %1, %c3_i32 : i32
    %c0_i32 = arith.constant 0 : i32
    %c0_i32_1 = arith.constant 0 : i32
    %c0_i32_2 = arith.constant 0 : i32
    return %arg0, %2, %c0_i32, %c0_i32_1 : i32, i32, i32, i32
  }
  func.func @transform_6(%arg0: i32, %arg1: i32) -> (i32, i32, i32, i32) {
    %c0_i32 = arith.constant 0 : i32
    %c0_i32_0 = arith.constant 0 : i32
    %c0_i32_1 = arith.constant 0 : i32
    return %arg0, %arg1, %c0_i32, %c0_i32_0 : i32, i32, i32, i32
  }
}

</mosaic_0001>

<bundles_post_ra>
// kernel: csam_forward.1
= control target key start
LH: loop header
LB: loop body
LE: loop exit
PB: predicated region body
PF: predicated region fallthrough
CT: control target
= control target key end

     0   :  { %s1458_s0 = inlined_call_operand.vmem [shape: f32[27], index: 0, kind: input, shape index: {}]   ;;  %s1459_s1 = inlined_call_operand.<no memory space> [shape: f32[1], index: 1, kind: input, shape index: {}]   ;;  %s1460_s2 = inlined_call_operand.<no memory space> [shape: f32[1], index: 2, kind: input, shape index: {}]   ;;  %s1461_s3 = inlined_call_operand.vmem [shape: f32[2,1,4,256], index: 3, kind: input, shape index: {}]   ;;  %s1462_s4 = inlined_call_operand.vmem [shape: f32[2,4,1,256], index: 4, kind: input, shape index: {}, may-alias: {4,5}]   ;;  %s1463_s5 = inlined_call_operand.vmem [shape: f32[2,4,1,256], index: 5, kind: input, shape index: {}, may-alias: {4,5}]   ;;  %s1464_s6 = inlined_call_operand.vmem [shape: f32[2,1,4,256], index: 6, kind: output, shape index: {}]  }
   0x1   :  { %11 = sst [smem:[#allocation2]] %s1459_s1 }
   0x2   :  { %12 = sst [smem:[#allocation3]] %s1460_s2 }
   0x3   :  { %13 = vsyncpa [#allocation5], 0  ;;  %s1226_s25 = smov 0   ;;  %s1228_s26 = smov 0  }
   0x4   :  { %s1230_s27 = smov 0  }
   0x5 LB: > { %s1030_s1 = sadd.s32 4294967295, %s1173_s27   ;;  %s31_s2 = sadd.s32 1, %s1169_s26  ;;  %s1173_s27 = sphi %s1230_s27, %s19_s27   ;;  %s1169_s26 = sphi %s1228_s26, %s1468_s26   ;;  %s1165_s25 = sphi %s1226_s25, %s1467_s25  }
   0x6   : > { %p33_p0 = scmp.ge.s32.totalorder %s31_s2, 2  ;;  %p1032_p1 = scmp.ge.s32.totalorder %s1173_s27, 1 }
   0x7   : > { %p227_p2 = scmp.lt.s32.totalorder %s1173_s27, 3  ;;  %p1251_p4 = scmp.eq.s32.totalorder %s1030_s1, 0 }
   0x8   : > { %s1470_s2 = smov (%p33_p0, %s31_s2), 0  ;;  %s240_s8 = sshll.u32 %s1458_s0, 4  ;;  %s241_s8 = int_to_ptr.vmem [resolvable:$true] %s240_s8 }
   0x9   : > { %p1247_p3 = pnand %p1032_p1, %p227_p2  ;;  %s1132_s9 = scalar_lea.vmem %s241_s8, 16 }
   0xa   : > { %p1133_p7 = scmp.ne.s32.totalorder %s241_s8, %s1132_s9  ;;  %p1140_p11 = scmp.lt.s32.totalorder %s241_s8, %s241_s8 }
   0xb   : > { %p1083_p5 = pneg %p1247_p3  ;;  %p1141_p12 = scmp.lt.s32.totalorder %s1132_s9, %s1132_s9 }
   0xd   : > { %p1084_p6 = pnand %p1251_p4, %p1083_p5  ;;  %p1142_p13 = por %p1141_p12, %p1140_p11 }
   0xf   : > { %p1134_p8 = pneg %p1084_p6 }
  0x11   : > { %p1135_p9 = pnand %p1134_p8, %p1133_p7 }
  0x13   : > { %p1136_p10 = pneg %p1135_p9 }
  0x15   : > { %p1143_p0 = pnand %p1142_p13, %p1136_p10 }
  0x17   : > { %1146 = shalt.err (!%p1143_p0)
}
  0x18   : > { %s1175_s10 = smov [#allocation4]   ;;  %309 = sbr.rel (%p1247_p3) target bundleno = 264 (0x108), region = 44 }
  0x19   : > { %1086 = dma.vmem_to_smem (!%p1084_p6), %s241_s8, 16, %s1175_s10, [#allocation5]  }
  0x1d   : > { %1160 = dma.done.wait (%p1251_p4), [#allocation5], 16  }
  0x1e   : > { %1162 = vsyncadd (%p1251_p4), [#allocation5], 4294967280 }
  0x1f   : > { %315 = sfence }
  0x20   : > { %p372_p1 = scmp.lt.s32.totalorder %s1165_s25, 1  ;;  %v436_v0 = vlaneseq  ;;  %vm463_vm0 = vcmask 1040384   ;;  %vm466_vm1 = vcmask 1044480   ;;  %s1176_s22 = smov 17   ;;  %vm516_vm4 = vcmask 138240  }
  0x21   : > { %s1177_s23 = smov 16   ;;  %s1178_s24 = smov 15   ;;  %v1184_v24 = vmov 0.0   ;;  %vm557_vm6 = vcmask 130048   ;;  %vm596_vm8 = vcmask 121856   ;;  %vm637_vm9 = vcmask 7168  }
  0x22   : > { %s1472_s25 = smov (!%p372_p1, %s1165_s25), 1  ;;  %v437_v1 = vshrl.u32 %v436_v0, 7  ;;  %s1180_s1 = smov 127   ;;  %v470_v20 = vand.u32 127, %v436_v0  ;;  %vm708_vm10 = vcmask 1039360   ;;  %vm749_vm11 = vcmask 924672  }
  0x23   : > { %s1270_s11 = sshll.u32 %s1472_s25, 3  ;;  %s1179_s25 = smov 1   ;;  %vm790_vm12 = vcmask 916480   ;;  %vm829_vm13 = vcmask 908288  }
  0x24   : > { %s380_s14 = scalar_lea.vmem %s1461_s3, %s1270_s11  ;;  %s392_s17 = scalar_lea.vmem %s1462_s4, %s1270_s11  ;;  %v438_v2 = vsub.s32 0, %v437_v1  ;;  %v442_v3 = vsub.s32 1, %v437_v1  ;;  %v471_v21 = vadd.s32 128, %v470_v20  ;;  %v476_v22 = vand.u32 15, %v470_v20 }
  0x25   : > { %s407_s18 = sadd.s32 6, %s1270_s11  ;;  %v1281_v4 = vld [vmem:[%s380_s14] sm:$0xff]  ;;  %s1181_s28 = smov 113  }
  0x26   : > { %v423_v5 = vld [vmem:[%s392_s17] sm:$0x3]  ;;  %s408_s21 = scalar_lea.vmem %s1463_s5, %s407_s18  ;;  %v448_v7 = vrot.slane %v1281_v4, 7  ;;  %v447_v8 = vcombine.high %v1281_v4, %v1281_v4  ;;  %s1182_s29 = smov 112   ;;  %v483_v23 = vand.u32 15, %v471_v21  ;;  %vm496_vm2 = vcmp.ne.s32.totalorder %v476_v22, 0 }
  0x27   : > { %v428_v6 = vmul.f32 0.0, %v423_v5  ;;  %v429_v9 = vld [vmem:[%s408_s21] sm:$0x3]  ;;  %s1183_s30 = smov 111   ;;  %s1309_s7 = sld [smem:[#allocation2]]  ;;  %v1329_v25 = vsel %vm496_vm2, 1.0, %v1184_v24 }
  0x28   : > { %v434_v10 = vmul.f32 0.0, %v429_v9  ;;  %v449_v13 = vrot.slane %v447_v8, 7  ;;  %s1311_s8 = sld [smem:[#allocation4]]  ;;  %vm497_vm3 = vcmp.ne.s32.totalorder %v483_v23, 0  ;;  %vm502_vm5 = vcmp.ne.s32.totalorder %v476_v22, 15 }
  0x29   : > { %v439_v11 = vrot.slane %v428_v6, %v438_v2  ;;  %v443_v12 = vrot.slane %v428_v6, %v442_v3  ;;  %s1313_s9 = sld [smem:[#allocation4 + $0x9]]  ;;  %v1333_v28 = vsel %vm497_vm3, 1.0, %v1184_v24  ;;  %vm503_vm7 = vcmp.ne.s32.totalorder %v483_v23, 15 }
  0x2a   : > { %v456_v14 = vrot.slane %v434_v10, %v438_v2  ;;  %v460_v16 = vrot.slane %v434_v10, %v442_v3  ;;  %s1315_s10 = sld [smem:[#allocation4 + $0x12]]  ;;  %v1341_v35 = vsel %vm502_vm5, 1.0, %v1184_v24  ;;  %v1348_v39 = vsel %vm503_vm7, 1.0, %v1184_v24 }
  0x2b   : > { %v464_v15 = vsel %vm463_vm0, %v439_v11, %v448_v7  ;;  %v465_v17 = vsel %vm463_vm0, %v443_v12, %v449_v13  ;;  %s1317_s12 = sld [smem:[#allocation4 + $0x1]] }
  0x2c   : > { %v1289_v18 = vsel %vm466_vm1, %v464_v15, %v456_v14  ;;  %v1293_v19 = vsel %vm466_vm1, %v465_v17, %v460_v16  ;;  %s1319_s13 = sld [smem:[#allocation4 + $0xa]] }
  0x2d   : > { %512 = vrot.lane.b32.xlu0 %v1289_v18, %s1176_s22  ;;  %553 = vrot.lane.b32.xlu1 %v1289_v18, %s1177_s23  ;;  %s1321_s14 = sld [smem:[#allocation4 + $0x13]]  ;;  %v509_v33 = vstv %s1309_s7 }
  0x2e   : > { %s1323_s15 = sld [smem:[#allocation4 + $0x2]]  ;;  %v524_v29 = vstv %s1311_s8 }
  0x2f   : > { %s1325_s16 = sld [smem:[#allocation4 + $0xb]]  ;;  %v530_v30 = vstv %s1313_s9 }
  0x30   : > { %s1327_s17 = sld [smem:[#allocation4 + $0x14]]  ;;  %v542_v31 = vstv %s1315_s10 }
  0x31   : > { %514 = vrot.lane.b32.xlu0 %v1293_v19, %s1176_s22  ;;  %555 = vrot.lane.b32.xlu1 %v1293_v19, %s1177_s23  ;;  %s1331_s18 = sld [smem:[#allocation4 + $0x3]]  ;;  %v563_v36 = vstv %s1317_s12 }
  0x32   : > { %s1343_s19 = sld [smem:[#allocation4 + $0xc]]  ;;  %v569_v37 = vstv %s1319_s13 }
  0x33   : > { %s1350_s20 = sld [smem:[#allocation4 + $0x15]]  ;;  %v581_v45 = vstv %s1321_s14 }
  0x34   : > { %v604_v47 = vstv %s1323_s15  ;;  %s1359_s21 = sld [smem:[#allocation4 + $0x4]] }
  0x35   : > { %592 = vrot.lane.b32.xlu0 %v1289_v18, %s1178_s24  ;;  %594 = vrot.lane.b32.xlu1 %v1293_v19, %s1178_s24  ;;  %v610_v48 = vstv %s1325_s16  ;;  %s1368_s22 = sld [smem:[#allocation4 + $0xd]] }
  0x36   : > { %v622_v55 = vstv %s1327_s17  ;;  %s1370_s23 = sld [smem:[#allocation4 + $0x16]]  ;;  %s421_s17 = scalar_lea.vmem %s1464_s6, %s1270_s11 }
  0x37   : > { %v645_v56 = vstv %s1331_s18  ;;  %s1377_s24 = sld [smem:[#allocation4 + $0x5]] }
  0x38   : > { %v651_v10 = vstv %s1343_s19  ;;  %s1413_s7 = sld [smem:[#allocation4 + $0x7]] }
  0x39   : > { %633 = vrot.lane.b32.xlu0 %v1289_v18, %s1179_s25  ;;  %635 = vrot.lane.b32.xlu1 %v1293_v19, %s1179_s25  ;;  %v663_v11 = vstv %s1350_s20  ;;  %s1380_s25 = sld [smem:[#allocation4 + $0xe]] }
  0x3a   : > { %s1415_s8 = sld [smem:[#allocation4 + $0x10]] }
  0x3b   : > { %s1419_s9 = sld [smem:[#allocation4 + $0x19]] }
  0x3c   : > { %s1425_s10 = sld [smem:[#allocation4 + $0x11]] }
  0x3d   : > { %706 = vrot.lane.b32.xlu1 %v1293_v19, %s1180_s1  ;;  %704 = vrot.lane.b32.xlu0 %v1289_v18, %s1180_s1  ;;  %s1386_s1 = sld [smem:[#allocation4 + $0x17]] }
  0x3e   : > { %s1427_s12 = sld [smem:[#allocation4 + $0x8]] }
  0x3f   : > { %s1432_s13 = sld [smem:[#allocation4 + $0x1a]] }
  0x40   : > { %s878_s14 = sld [smem:[#allocation3]] }
  0x41   : > { %747 = vrot.lane.b32.xlu1 %v1293_v19, %s1181_s28  ;;  %745 = vrot.lane.b32.xlu0 %v1289_v18, %s1181_s28  ;;  %s1397_s28 = sld [smem:[#allocation4 + $0xf]] }
  0x45   : > { %788 = vrot.lane.b32.xlu1 %v1293_v19, %s1182_s29  ;;  %786 = vrot.lane.b32.xlu0 %v1289_v18, %s1182_s29  ;;  %s1401_s29 = sld [smem:[#allocation4 + $0x6]] }
  0x49   : > { %827 = vrot.lane.b32.xlu1 %v1293_v19, %s1183_s30  ;;  %825 = vrot.lane.b32.xlu0 %v1289_v18, %s1183_s30  ;;  %s1406_s30 = sld [smem:[#allocation4 + $0x18]] }
  0x9f   : > { %v513_v26 = vpop.permute.xlu0 %512  ;;  %v554_v27 = vpop.permute.xlu1 %553 }
  0xa0   : > { %v520_v32 = vsel %vm516_vm4, 0.0, %v513_v26  ;;  %v561_v38 = vsel %vm557_vm6, 0.0, %v554_v27 }
  0xa1   : > { %v521_v34 = vmul.f32 %v1329_v25, %v520_v32  ;;  %v570_v51 = vmul.f32 %v569_v37, %v561_v38  ;;  %v564_v54 = vmul.f32 %v563_v36, %v561_v38  ;;  %v582_v63 = vmul.f32 %v581_v45, %v561_v38 }
  0xa3   : > { %v525_v40 = vmul.f32 %v524_v29, %v521_v34  ;;  %v531_v41 = vmul.f32 %v530_v30, %v521_v34  ;;  %v543_v42 = vmul.f32 %v542_v31, %v521_v34  ;;  %v515_v43 = vpop.permute.xlu0 %514  ;;  %v556_v44 = vpop.permute.xlu1 %555  ;;  %v574_v5 = vrot.slane %v570_v51, 1 }
  0xa4   : > { %v517_v46 = vsel %vm516_vm4, %v513_v26, %v515_v43  ;;  %v558_v0 = vsel %vm557_vm6, %v554_v27, %v556_v44  ;;  %v586_v20 = vrot.slane %v582_v63, 2 }
  0xa5   : > { %v527_v49 = vadd.f32 %v525_v40, %v509_v33  ;;  %v535_v50 = vrot.slane %v531_v41, 1  ;;  %v522_v52 = vmul.f32 %v1333_v28, %v517_v46  ;;  %v547_v53 = vrot.slane %v543_v42, 2 }
  0xa6   : > { %v571_v15 = vmul.f32 %v569_v37, %v558_v0  ;;  %v565_v21 = vmul.f32 %v563_v36, %v558_v0  ;;  %v583_v22 = vmul.f32 %v581_v45, %v558_v0 }
  0xa7   : > { %v539_v57 = vadd.f32 %v535_v50, %v527_v49  ;;  %v526_v58 = vmul.f32 %v524_v29, %v522_v52  ;;  %v532_v59 = vmul.f32 %v530_v30, %v522_v52  ;;  %v544_v60 = vmul.f32 %v542_v31, %v522_v52  ;;  %v593_v61 = vpop.permute.xlu0 %592  ;;  %v595_v62 = vpop.permute.xlu1 %594 }
  0xa8   : > { %v600_v1 = vsel %vm596_vm8, 0.0, %v593_v61  ;;  %v597_v2 = vsel %vm596_vm8, %v593_v61, %v595_v62  ;;  %v675_v31 = vstv %s1359_s21  ;;  %v575_v38 = vrot.slane %v571_v15, 1 }
  0xa9   : > { %v551_v3 = vadd.f32 %v547_v53, %v539_v57  ;;  %v528_v6 = vadd.f32 %v526_v58, %v509_v33  ;;  %v536_v7 = vrot.slane %v532_v59, 1  ;;  %v601_v8 = vmul.f32 %v1341_v35, %v600_v1 }
  0xaa   : > { %v602_v9 = vmul.f32 %v1348_v39, %v597_v2  ;;  %v548_v14 = vrot.slane %v544_v60, 2  ;;  %v587_v36 = vrot.slane %v583_v22, 2  ;;  %v681_v53 = vstv %s1368_s22 }
  0xab   : > { %v566_v12 = vadd.f32 %v564_v54, %v551_v3  ;;  %v540_v13 = vadd.f32 %v536_v7, %v528_v6  ;;  %v634_v16 = vpop.permute.xlu0 %633  ;;  %v636_v17 = vpop.permute.xlu1 %635  ;;  %v611_v23 = vmul.f32 %v610_v48, %v601_v8  ;;  %v605_v27 = vmul.f32 %v604_v47, %v601_v8 }
  0xac   : > { %v623_v29 = vmul.f32 %v622_v55, %v601_v8  ;;  %v612_v30 = vmul.f32 %v610_v48, %v602_v9  ;;  %v641_v32 = vsel %vm637_vm9, 0.0, %v634_v16  ;;  %v638_v33 = vsel %vm637_vm9, %v634_v16, %v636_v17 }
  0xad   : > { %v578_v24 = vadd.f32 %v574_v5, %v566_v12  ;;  %v552_v26 = vadd.f32 %v548_v14, %v540_v13  ;;  %v615_v40 = vrot.slane %v611_v23, 1  ;;  %v606_v41 = vmul.f32 %v604_v47, %v602_v9 }
  0xae   : > { %v642_v42 = vmul.f32 %v1329_v25, %v641_v32  ;;  %v627_v45 = vrot.slane %v623_v29, 2  ;;  %v643_v46 = vmul.f32 %v1333_v28, %v638_v33  ;;  %v616_v50 = vrot.slane %v612_v30, 1 }
  0xaf   : > { %v590_v34 = vadd.f32 %v586_v20, %v578_v24  ;;  %v567_v37 = vadd.f32 %v565_v21, %v552_v26  ;;  %v707_v48 = vpop.permute.xlu1 %706  ;;  %v705_v49 = vpop.permute.xlu0 %704  ;;  %v624_v51 = vmul.f32 %v622_v55, %v602_v9  ;;  %v693_v59 = vstv %s1370_s23 }
  0xb0   : > { %v652_v52 = vmul.f32 %v651_v10, %v642_v42  ;;  %v646_v57 = vmul.f32 %v645_v56, %v642_v42  ;;  %v664_v58 = vmul.f32 %v663_v11, %v642_v42  ;;  %v709_v60 = vsel %vm708_vm10, %v705_v49, %v707_v48 }
  0xb1   : > { %v579_v43 = vadd.f32 %v575_v38, %v567_v37  ;;  %v607_v44 = vadd.f32 %v605_v27, %v590_v34  ;;  %v653_v55 = vmul.f32 %v651_v10, %v643_v46  ;;  %v628_v0 = vrot.slane %v624_v51, 2 }
  0xb2   : > { %v656_v63 = vrot.slane %v652_v52, 1  ;;  %v676_v1 = vmul.f32 %v675_v31, %v1289_v18  ;;  %v682_v2 = vmul.f32 %v681_v53, %v1289_v18  ;;  %v668_v6 = vrot.slane %v664_v58, 2 }
  0xb3   : > { %v591_v47 = vadd.f32 %v587_v36, %v579_v43  ;;  %v619_v54 = vadd.f32 %v615_v40, %v607_v44  ;;  %v647_v7 = vmul.f32 %v645_v56, %v643_v46  ;;  %v712_v8 = vsel %vm708_vm10, %v707_v48, 0.0  ;;  %v748_v16 = vpop.permute.xlu1 %747  ;;  %v746_v56 = vpop.permute.xlu0 %745 }
  0xb4   : > { %v694_v9 = vmul.f32 %v693_v59, %v1289_v18  ;;  %v713_v12 = vmul.f32 %v1341_v35, %v709_v60  ;;  %v657_v14 = vrot.slane %v653_v55, 1  ;;  %v665_v15 = vmul.f32 %v663_v11, %v643_v46 }
  0xb5   : > { %v631_v61 = vadd.f32 %v627_v45, %v619_v54  ;;  %v608_v62 = vadd.f32 %v606_v41, %v591_v47  ;;  %v677_v17 = vmul.f32 %v675_v31, %v1293_v19  ;;  %v722_v20 = vstv %s1380_s25 }
  0xb6   : > { %v683_v18 = vmul.f32 %v681_v53, %v1293_v19  ;;  %v686_v21 = vrot.slane %v682_v2, 1  ;;  %v716_v24 = vstv %s1377_s24  ;;  %v734_v26 = vstv %s1386_s1 }
  0xb7   : > { %v620_v3 = vadd.f32 %v616_v50, %v608_v62  ;;  %v648_v5 = vadd.f32 %v646_v57, %v631_v61  ;;  %v695_v27 = vmul.f32 %v693_v59, %v1293_v19  ;;  %v714_v11 = vmul.f32 %v1348_v39, %v712_v8  ;;  %v789_v43 = vpop.permute.xlu1 %788  ;;  %v787_v44 = vpop.permute.xlu0 %786 }
  0xb8   : > { %v698_v29 = vrot.slane %v694_v9, 2  ;;  %v750_v30 = vsel %vm749_vm11, %v746_v56, %v748_v16  ;;  %v669_v31 = vrot.slane %v665_v15, 2  ;;  %v723_v34 = vmul.f32 %v722_v20, %v713_v12 }
  0xb9   : > { %v632_v10 = vadd.f32 %v628_v0, %v620_v3  ;;  %v660_v13 = vadd.f32 %v656_v63, %v648_v5  ;;  %v687_v37 = vrot.slane %v683_v18, 1  ;;  %v717_v38 = vmul.f32 %v716_v24, %v713_v12 }
  0xba   : > { %v735_v40 = vmul.f32 %v734_v26, %v713_v12  ;;  %v753_v41 = vsel %vm749_vm11, %v748_v16, 0.0  ;;  %v754_v42 = vmul.f32 %v1329_v25, %v750_v30  ;;  %v699_v45 = vrot.slane %v695_v27, 2 }
  0xbb   : > { %v672_v22 = vadd.f32 %v668_v6, %v660_v13  ;;  %v649_v23 = vadd.f32 %v647_v7, %v632_v10  ;;  %v724_v46 = vmul.f32 %v722_v20, %v714_v11  ;;  %v763_v48 = vstv %s1397_s28 }
  0xbc   : > { %v727_v51 = vrot.slane %v723_v34, 1  ;;  %v757_v52 = vstv %s1401_s29  ;;  %v718_v53 = vmul.f32 %v716_v24, %v714_v11  ;;  %v775_v47 = vstv %s1406_s30 }
  0xbd   : > { %v678_v32 = vadd.f32 %v676_v1, %v672_v22  ;;  %v661_v33 = vadd.f32 %v657_v14, %v649_v23  ;;  %v755_v54 = vmul.f32 %v1333_v28, %v753_v41  ;;  %v739_v25 = vrot.slane %v735_v40, 2  ;;  %v828_v28 = vpop.permute.xlu1 %827  ;;  %v826_v1 = vpop.permute.xlu0 %825 }
  0xbe   : > { %v764_v59 = vmul.f32 %v763_v48, %v754_v42  ;;  %v728_v60 = vrot.slane %v724_v46, 1  ;;  %v736_v61 = vmul.f32 %v734_v26, %v714_v11  ;;  %v758_v55 = vmul.f32 %v757_v52, %v754_v42 }
  0xbf   : > { %v673_v19 = vadd.f32 %v669_v31, %v661_v33  ;;  %v690_v36 = vadd.f32 %v686_v21, %v678_v32  ;;  %v776_v0 = vmul.f32 %v775_v47, %v754_v42  ;;  %v765_v2 = vmul.f32 %v763_v48, %v755_v54 }
  0xc0   : > { %v796_v3 = vstv %s1413_s7  ;;  %v802_v5 = vstv %s1415_s8  ;;  %v791_v6 = vsel %vm790_vm12, %v787_v44, %v789_v43  ;;  %v768_v9 = vrot.slane %v764_v59, 1 }
  0xc1   : > { %v679_v49 = vadd.f32 %v677_v17, %v673_v19  ;;  %v702_v50 = vadd.f32 %v698_v29, %v690_v36  ;;  %v814_v12 = vstv %s1419_s9  ;;  %v740_v10 = vrot.slane %v736_v61, 2 }
  0xc2   : > { %v759_v13 = vmul.f32 %v757_v52, %v755_v54  ;;  %v794_v14 = vsel %vm790_vm12, %v789_v43, 0.0  ;;  %v830_v15 = vsel %vm829_vm13, %v826_v1, %v828_v28  ;;  %v780_v17 = vrot.slane %v776_v0, 2 }
  0xc3   : > { %v691_v57 = vadd.f32 %v687_v37, %v679_v49  ;;  %v719_v58 = vadd.f32 %v717_v38, %v702_v50  ;;  %v803_v20 = vmul.f32 %v802_v5, %v791_v6  ;;  %v769_v18 = vrot.slane %v765_v2, 1 }
  0xc4   : > { %v777_v21 = vmul.f32 %v775_v47, %v755_v54  ;;  %v797_v22 = vmul.f32 %v796_v3, %v791_v6  ;;  %v833_v23 = vsel %vm829_vm13, %v828_v28, 0.0  ;;  %v815_v27 = vmul.f32 %v814_v12, %v791_v6 }
  0xc5   : > { %v703_v62 = vadd.f32 %v699_v45, %v691_v57  ;;  %v731_v63 = vadd.f32 %v727_v51, %v719_v58  ;;  %v834_v11 = vmul.f32 %v1341_v35, %v830_v15  ;;  %v804_v29 = vmul.f32 %v802_v5, %v794_v14 }
  0xc6   : > { %v843_v30 = vstv %s1425_s10  ;;  %v807_v31 = vrot.slane %v803_v20, 1  ;;  %v837_v34 = vstv %s1427_s12  ;;  %v781_v37 = vrot.slane %v777_v21, 2 }
  0xc7   : > { %v720_v7 = vadd.f32 %v718_v53, %v703_v62  ;;  %v743_v8 = vadd.f32 %v739_v25, %v731_v63  ;;  %v798_v38 = vmul.f32 %v796_v3, %v794_v14  ;;  %v855_v40 = vstv %s1432_s13 }
  0xc8   : > { %v835_v19 = vmul.f32 %v1348_v39, %v833_v23  ;;  %v819_v42 = vrot.slane %v815_v27, 2  ;;  %v844_v43 = vmul.f32 %v843_v30, %v834_v11  ;;  %v808_v44 = vrot.slane %v804_v29, 1 }
  0xc9   : > { %v732_v16 = vadd.f32 %v728_v60, %v720_v7  ;;  %v760_v56 = vadd.f32 %v758_v55, %v743_v8  ;;  %v816_v45 = vmul.f32 %v814_v12, %v794_v14  ;;  %v838_v35 = vmul.f32 %v837_v34, %v834_v11 }
  0xca   : > { %v856_v49 = vmul.f32 %v855_v40, %v834_v11  ;;  %v845_v52 = vmul.f32 %v843_v30, %v835_v19  ;;  %v848_v53 = vrot.slane %v844_v43, 1  ;;  %v839_v57 = vmul.f32 %v837_v34, %v835_v19 }
  0xcb   : > { %v744_v24 = vadd.f32 %v740_v10, %v732_v16  ;;  %v772_v26 = vadd.f32 %v768_v9, %v760_v56  ;;  %v820_v47 = vrot.slane %v816_v45, 2  ;;  %v857_v60 = vmul.f32 %v855_v40, %v835_v19 }
  0xcc   : > { %v860_v25 = vrot.slane %v856_v49, 2  ;;  %v849_v59 = vrot.slane %v845_v52, 1  ;;  %v879_v9 = vstv %s878_s14 }
  0xcd   : > { %v761_v32 = vadd.f32 %v759_v13, %v744_v24  ;;  %v784_v33 = vadd.f32 %v780_v17, %v772_v26  ;;  %v861_v0 = vrot.slane %v857_v60, 2 }
  0xcf   : > { %v773_v36 = vadd.f32 %v769_v18, %v761_v32  ;;  %v799_v41 = vadd.f32 %v797_v22, %v784_v33 }
  0xd1   : > { %v785_v46 = vadd.f32 %v781_v37, %v773_v36  ;;  %v811_v48 = vadd.f32 %v807_v31, %v799_v41 }
  0xd3   : > { %v800_v50 = vadd.f32 %v798_v38, %v785_v46  ;;  %v823_v51 = vadd.f32 %v819_v42, %v811_v48 }
  0xd5   : > { %v812_v54 = vadd.f32 %v808_v44, %v800_v50  ;;  %v840_v58 = vadd.f32 %v838_v35, %v823_v51 }
  0xd7   : > { %v824_v39 = vadd.f32 %v820_v47, %v812_v54  ;;  %v852_v61 = vadd.f32 %v848_v53, %v840_v58 }
  0xd9   : > { %v841_v62 = vadd.f32 %v839_v57, %v824_v39  ;;  %v864_v63 = vadd.f32 %v860_v25, %v852_v61 }
  0xdb   : > { %v853_v55 = vadd.f32 %v849_v59, %v841_v62  ;;  %v1073_v28 = vmul.f32 -1.442695, %v864_v63 }
  0xdd   : > { %v865_v1 = vadd.f32 %v861_v0, %v853_v55  ;;  %1124 = vpow2.f32 %v1073_v28 }
  0xdf   : > { %v1074_v2 = vmul.f32 -1.442695, %v865_v1 }
  0xe1   : > { %1126 = vpow2.f32 %v1074_v2 }
  0xea   : > { %v1125_v3 = vpop.eup %1124 }
  0xeb   : > { %v872_v5 = vadd.f32 1.0, %v1125_v3 }
  0xed   : > { %1128 = vrcp.f32 %v872_v5 }
  0xee   : > { %v1127_v6 = vpop.eup %1126 }
  0xef   : > { %v873_v7 = vadd.f32 1.0, %v1127_v6 }
  0xf1   : > { %1130 = vrcp.f32 %v873_v7 }
  0xfa   : > { %v1129_v8 = vpop.eup %1128 }
  0xfb   : > { %v880_v13 = vmul.f32 %v1129_v8, %v879_v9 }
  0xfe   : > { %v1131_v12 = vpop.eup %1130 }
  0xff   : > { %v881_v10 = vmul.f32 %v1131_v12, %v879_v9 }
 0x101   : > { %v884_v14 = vcombine.low %v880_v13, %v881_v10 }
 0x103   : > { %v886_v15 = vmul.f32 %v884_v14, %v1281_v4 }
 0x105   : > { %v887_v16 = vadd.f32 %v886_v15, %v1281_v4 }
 0x107   : > { %888 = vst [vmem:[%s421_s17] sm:$0xff] %v887_v16 }
 0x108 PF: > { %s19_s27 = sadd.s32 1, %s1173_s27   ;;  %s1467_s25 = smov %s1169_s26 }
 0x109   : > { %p16_p2 = scmp.ge.s32.totalorder %s19_s27, 4   ;;  %s1468_s26 = smov %s1470_s2 }
 0x10b   :  { %18 = sbr.rel (!%p16_p2) target bundleno = 5 (0x5), region = 85 }
 0x110   :  { %918 = vsyncpa [#allocation5], 1 }
 0x111   :  { %920 = vsyncpa [#allocation5 + $0x1], 1 }

</bundles_post_ra>
